<compile_context>
chip_gen: v6e
topology: v6e:2x2x1
jax: 0.10.0
libtpu: 0.0.40
codegen_flags: <defaults>
</compile_context>

<pallas_src>
import functools
import math

import jax
import jax.numpy as jnp
from jax import lax
from jax.experimental import pallas as pl
from jax.experimental.pallas import tpu as pltpu


# ---------------------------------------------------------------------------
# Kernel 1: fused K/Q/V projection (single MXU pass, no transposes in-kernel).
# ---------------------------------------------------------------------------
def _qkv_proj_kernel(x_ref, w_ref, kqv_ref):
    # x_ref:   (block_t, Din)
    # w_ref:   (Din, 3*Dout)  == [Wk^T * scale | Wq^T | Wv^T]
    # kqv_ref: (block_t, 3*Dout)
    kqv_ref[...] = jnp.dot(
        x_ref[...], w_ref[...], preferred_element_type=jnp.float32
    ).astype(kqv_ref.dtype)


# ---------------------------------------------------------------------------
# Kernel 2: causal "K @ Q^T" attention, flash-style online softmax.
# ---------------------------------------------------------------------------
def _attn_kernel(k_ref, q_ref, v_ref, o_ref, m_sc, l_sc, acc_sc):
    r = pl.program_id(1)          # row tile   (key positions / output rows)
    c = pl.program_id(2)          # col tile   (query positions / value rows)

    @pl.when(c == 0)
    def _init():
        m_sc[...] = jnp.full_like(m_sc, -jnp.inf)
        l_sc[...] = jnp.zeros_like(l_sc)
        acc_sc[...] = jnp.zeros_like(acc_sc)

    def _update(apply_mask):
        k = k_ref[...]            # (bt, D)  (scale already folded into Wk)
        q = q_ref[...]            # (bt, D)
        v = v_ref[...]            # (bt, D)
        # s[i, j] = k_i . q_j  : contract feature axes of both operands
        # directly (A @ B^T form) -> MXU-native, no XLU transpose.
        s = lax.dot_general(
            k, q, (((1,), (1,)), ((), ())),
            preferred_element_type=jnp.float32)              # (bt, bt)
        if apply_mask:
            # Diagonal tile only: local lower-triangular mask (row/col tiles
            # share the same base offset because both tile sizes are equal).
            row = lax.broadcasted_iota(jnp.int32, s.shape, 0)
            col = lax.broadcasted_iota(jnp.int32, s.shape, 1)
            s = jnp.where(col <= row, s, -jnp.inf)
        m_prev = m_sc[...]
        m_new = jnp.maximum(m_prev, jnp.max(s, axis=-1, keepdims=True))
        alpha = jnp.exp(m_prev - m_new)
        p = jnp.exp(s - m_new)
        l_sc[...] = alpha * l_sc[...] + jnp.sum(p, axis=-1, keepdims=True)
        acc_sc[...] = alpha * acc_sc[...] + jnp.dot(
            p.astype(v.dtype), v, preferred_element_type=jnp.float32)
        m_sc[...] = m_new

    # Causality at tile granularity: tiles strictly above the diagonal are
    # skipped entirely; only the diagonal tile pays for the mask.
    @pl.when(c < r)
    def _full_tile():
        _update(apply_mask=False)

    @pl.when(c == r)
    def _diag_tile():
        _update(apply_mask=True)

    @pl.when(c == pl.num_programs(2) - 1)
    def _finalize():
        inv_l = pl.reciprocal(l_sc[...], approx=False)       # (bt, 1)
        o_ref[...] = (acc_sc[...] * inv_l).astype(o_ref.dtype)


# ---------------------------------------------------------------------------
# Wrapper
# ---------------------------------------------------------------------------
def self_attention(x, wk, wq, wv, *, block_t=128):
    """x: (B, T, Din); wk/wq/wv: (Dout, Din) nn.Linear layout. -> (B, T, Dout)."""
    B, T, Din = x.shape
    Dout = wk.shape[0]

    block_t = min(block_t, T)
    assert T % block_t == 0, "T must be divisible by the tile size"
    assert block_t % 8 == 0, "tile size must be sublane-aligned"
    # TODO(synk): pad Dout to a multiple of 128 for non-aligned head sizes.
    assert Dout % 128 == 0, "Dout must be a multiple of 128 (lane-dense blocks)"

    # d_k in the reference is key.shape[1] == T (faithful to the PyTorch code,
    # even though standard attention would use sqrt(Dout)).
    scale = 1.0 / math.sqrt(T)

    # One fused (Din, 3*Dout) weight; scale folded into the K columns once
    # here (tiny weight-sized op) so the kernels never touch O(T*T) scaling.
    w_kqv = jnp.concatenate([wk.T * scale, wq.T, wv.T], axis=1)

    n_t = T // block_t

    # --- fused projection: kqv[:, :, 0:D]=K*scale, [D:2D]=Q, [2D:3D]=V -------
    kqv = pl.pallas_call(
        _qkv_proj_kernel,
        out_shape=jax.ShapeDtypeStruct((B, T, 3 * Dout), jnp.float32),
        grid_spec=pltpu.PrefetchScalarGridSpec(
            num_scalar_prefetch=0,
            grid=(B, n_t),
            in_specs=[
                pl.BlockSpec((pl.Squeezed(), block_t, Din),
                             lambda b, i: (b, i, 0)),
                pl.BlockSpec((Din, 3 * Dout), lambda b, i: (0, 0)),
            ],
            out_specs=pl.BlockSpec((pl.Squeezed(), block_t, 3 * Dout),
                                   lambda b, i: (b, i, 0)),
        ),
        compiler_params=pltpu.CompilerParams(
            dimension_semantics=("parallel", "parallel"),
        ),
    )(x, w_kqv)

    # --- flash-style causal attention ---------------------------------------
    def _k_map(b, r, c):
        return (b, r, 0)

    def _q_map(b, r, c):
        # Clamp above-diagonal (skipped) tiles to the diagonal so those grid
        # steps re-use the resident block instead of fetching dead data.
        return (b, jnp.minimum(c, r), 1)

    def _v_map(b, r, c):
        return (b, jnp.minimum(c, r), 2)

    out = pl.pallas_call(
        _attn_kernel,
        out_shape=jax.ShapeDtypeStruct((B, T, Dout), jnp.float32),
        grid_spec=pltpu.PrefetchScalarGridSpec(
            num_scalar_prefetch=0,
            grid=(B, n_t, n_t),
            in_specs=[
                pl.BlockSpec((pl.Squeezed(), block_t, Dout), _k_map),
                pl.BlockSpec((pl.Squeezed(), block_t, Dout), _q_map),
                pl.BlockSpec((pl.Squeezed(), block_t, Dout), _v_map),
            ],
            out_specs=pl.BlockSpec((pl.Squeezed(), block_t, Dout),
                                   lambda b, r, c: (b, r, 0)),
            scratch_shapes=[
                pltpu.VMEM((block_t, 1), jnp.float32),      # running max
                pltpu.VMEM((block_t, 1), jnp.float32),      # running denom
                pltpu.VMEM((block_t, Dout), jnp.float32),   # running numerator
            ],
        ),
        compiler_params=pltpu.CompilerParams(
            dimension_semantics=("parallel", "parallel", "arbitrary"),
        ),
    )(kqv, kqv, kqv)

    return out


# ---------------------------------------------------------------------------
# Pure-JAX reference mirroring the PyTorch forward.
# ---------------------------------------------------------------------------
def _reference(x, wk, wq, wv):
    key = x @ wk.T
    query = x @ wq.T
    value = x @ wv.T
    d_k = key.shape[1]                       # == T, as in the PyTorch module
    kq = key @ jnp.swapaxes(query, 1, 2) / (d_k ** 0.5)
    T = x.shape[1]
    mask = jnp.tril(jnp.ones((T, T)))
    kq_masked = jnp.where(mask == 0, -jnp.inf, kq)
    softmax_kq = jax.nn.softmax(kq_masked, axis=-1)
    return softmax_kq @ value


if __name__ == "__main__":
    # Small but TPU-friendly shapes (128-lane aligned, 2x2 score tiles so the
    # full-tile, diagonal-tile and skipped-tile code paths all execute).
    B, T, IN_DIM, OUT_DIM = 2, 256, 128, 128

    key = jax.random.PRNGKey(0)
    kx, kk, kq, kv = jax.random.split(key, 4)

    x = jax.random.normal(kx, (B, T, IN_DIM), dtype=jnp.float32)
    # nn.Linear default init ~ U(-1/sqrt(in_dim), 1/sqrt(in_dim)); deterministic.
    bound = 1.0 / (IN_DIM ** 0.5)
    wk = jax.random.uniform(kk, (OUT_DIM, IN_DIM), jnp.float32, -bound, bound)
    wq = jax.random.uniform(kq, (OUT_DIM, IN_DIM), jnp.float32, -bound, bound)
    wv = jax.random.uniform(kv, (OUT_DIM, IN_DIM), jnp.float32, -bound, bound)

    out = jax.block_until_ready(self_attention(x, wk, wq, wv))

    ref = _reference(x, wk, wq, wv)
    assert out.shape == (B, T, OUT_DIM)
    assert jnp.allclose(out, ref, atol=1e-4, rtol=1e-4), "mismatch vs reference"

    print("KERNEL_OK")
</pallas_src>

<mosaic_0001>
module attributes {stable_mosaic.version = 11 : i64} {
  func.func @_qkv_proj_kernel(%arg0: i32, %arg1: i32, %arg2: memref<1x128x128xf32, #tpu.memory_space<vmem>>, %arg3: memref<128x384xf32, #tpu.memory_space<vmem>>, %arg4: memref<1x128x384xf32, #tpu.memory_space<vmem>>) attributes {dimension_semantics = [#tpu.dimension_semantics<parallel>, #tpu.dimension_semantics<parallel>], iteration_bounds = array<i64: 2, 2>, scalar_prefetch = 0 : i64, scratch_operands = 0 : i64, tpu.core_type = #tpu.core_type<tc>, window_params = [{transform_indices = @transform_0, window_bounds = array<i64: 1, 128, 128>}, {pipeline_mode = #tpu.pipeline_mode<synchronous>, transform_indices = @transform_1, window_bounds = array<i64: 128, 384>}, {transform_indices = @transform_2, window_bounds = array<i64: 1, 128, 384>}]} {
    %c0 = arith.constant 0 : index
    %c0_0 = arith.constant 0 : index
    %c0_1 = arith.constant 0 : index
    %0 = vector.load %arg2[%c0, %c0_0, %c0_1] : memref<1x128x128xf32, #tpu.memory_space<vmem>>, vector<1x128x128xf32>
    %1 = vector.shape_cast %0 : vector<1x128x128xf32> to vector<128x128xf32>
    %c0_2 = arith.constant 0 : index
    %c0_3 = arith.constant 0 : index
    %2 = vector.load %arg3[%c0_2, %c0_3] : memref<128x384xf32, #tpu.memory_space<vmem>>, vector<128x384xf32>
    %cst = arith.constant dense<0.000000e+00> : vector<128x384xf32>
    %3 = tpu.matmul %1, %2, %cst {dimension_numbers = #tpu.dot_dimension_numbers<[1], [0], [0], [1], [0, 0, 1, 1], [], []>} : vector<128x128xf32>, vector<128x384xf32>, vector<128x384xf32> -> vector<128x384xf32>
    %c0_4 = arith.constant 0 : index
    %c0_5 = arith.constant 0 : index
    %c0_6 = arith.constant 0 : index
    %4 = vector.load %arg4[%c0_4, %c0_5, %c0_6] : memref<1x128x384xf32, #tpu.memory_space<vmem>>, vector<1x128x384xf32>
    %5 = vector.shape_cast %4 : vector<1x128x384xf32> to vector<128x384xf32>
    %6 = vector.shape_cast %3 : vector<128x384xf32> to vector<1x128x384xf32>
    tpu.vector_store %arg4[%c0_4, %c0_5, %c0_6], %6 {strides = array<i32>} : memref<1x128x384xf32, #tpu.memory_space<vmem>>, vector<1x128x384xf32>,
    return
  }
  func.func @transform_0(%arg0: i32, %arg1: i32) -> (i32, i32, i32) {
    %c0_i32 = arith.constant 0 : i32
    %c0_i32_0 = arith.constant 0 : i32
    return %arg0, %arg1, %c0_i32 : i32, i32, i32
  }
  func.func @transform_1(%arg0: i32, %arg1: i32) -> (i32, i32) {
    %c0_i32 = arith.constant 0 : i32
    %c0_i32_0 = arith.constant 0 : i32
    %c0_i32_1 = arith.constant 0 : i32
    return %c0_i32, %c0_i32_0 : i32, i32
  }
  func.func @transform_2(%arg0: i32, %arg1: i32) -> (i32, i32, i32) {
    %c0_i32 = arith.constant 0 : i32
    %c0_i32_0 = arith.constant 0 : i32
    return %arg0, %arg1, %c0_i32 : i32, i32, i32
  }
}

</mosaic_0001>

<bundles_post_ra>
// kernel: tpu_custom_call.1
= control target key start
LH: loop header
LB: loop body
LE: loop exit
PB: predicated region body
PF: predicated region fallthrough
CT: control target
= control target key end

     0   :  { %s1400_s0 = inlined_call_operand.hbm [shape: f32[2,256,128], index: 0, kind: input, shape index: {}]   ;;  %s1401_s1 = inlined_call_operand.hbm [shape: f32[128,384], index: 1, kind: input, shape index: {}]   ;;  %s1402_s2 = inlined_call_operand.hbm [shape: f32[2,256,384], index: 2, kind: output, shape index: {}]  }
   0x1   :  { %1407 = sst [smem:[#allocation14_spill]] %s1401_s1 }
   0x2   :  { %7 = vsyncpa [#allocation3], 0 }
   0x3   :  { %9 = vsyncpa [#allocation3 + $0x1], 0 }
   0x4   :  { %10 = vsyncpa [#allocation6], 0 }
   0x5   :  { %11 = vsyncpa [#allocation4], 0 }
   0x6   :  { %13 = vsyncpa [#allocation4 + $0x1], 0  ;;  %s1117_s9 = smov 0   ;;  %s1119_s10 = smov 0  }
   0x7   :  { %s1121_s11 = smov 0   ;;  %s1123_s12 = smov 0  }
   0x8   :  { %s1125_s13 = smov 0   ;;  %s1127_s14 = smov 0  }
   0x9   :  { %s1129_s15 = smov 0   ;;  %s1131_s16 = smov 0  }
   0xa LB: > { %1408 = sst [smem:[#allocation11_spill]] %s1082_s14  ;;  %s732_s17 = sadd.s32 4294967295, %s1090_s16   ;;  %s1090_s16 = sphi %s1131_s16, %s19_s16   ;;  %s1086_s15 = sphi %s1129_s15, %s1429_s15   ;;  %s1082_s14 = sphi %s1127_s14, %s1424_s14   ;;  %s1078_s13 = sphi %s1125_s13, %s1428_s13   ;;  %s1074_s12 = sphi %s1123_s12, %s1423_s12   ;;  %s1070_s11 = sphi %s1121_s11, %s1427_s11   ;;  %s1066_s10 = sphi %s1119_s10, %s1426_s10   ;;  %s1062_s9 = sphi %s1117_s9, %s1425_s9  }
   0xb   : > { %s733_s18 = sadd.s32 4294967294, %s1090_s16   ;;  %p53_p0 = scmp.ne.s32.totalorder %s1066_s10, %s1062_s9 }
   0xc   : > { %p1161_p1 = scmp.eq.s32.totalorder %s732_s17, 0  ;;  %p1165_p2 = scmp.eq.s32.totalorder %s732_s17, 3 }
   0xd   : > { %p106_p3 = scmp.eq.s32.totalorder %s733_s18, 3  ;;  %p734_p5 = scmp.ge.s32.totalorder %s1090_s16, 1 }
   0xe   : > { %p1171_p4 = por %p1161_p1, %p53_p0  ;;  %p113_p7 = scmp.lt.s32.totalorder %s1090_s16, 5 }
   0xf   : > { %p1176_p6 = por %p106_p3, %p53_p0  ;;  %s1092_s24 = smov [#allocation5]  }
  0x10   : > { %s1411_s21 = scalar_select %p1171_p4, 1, 0 }
  0x11   : > { %s1412_s22 = scalar_select %p1176_p6, 1, 0 }
  0x12   : > { %p1181_p8 = pnand %p734_p5, %p113_p7  ;;  %s125_s25 = sshll.u32 %s1092_s24, 4  ;;  %s126_s25 = int_to_ptr.vmem [resolvable:$true] %s125_s25 }
  0x13   : > { %1413 = sst [smem:[#allocation12_spill]] %s1412_s22  ;;  %s947_s26 = scalar_lea.vmem %s126_s25, 6144 }
  0x14   : > { %p848_p9 = pneg %p1181_p8  ;;  %p948_p12 = scmp.ne.s32.totalorder %s126_s25, %s947_s26 }
  0x15   : > { %p955_p3 = scmp.lt.s32.totalorder %s126_s25, %s126_s25  ;;  %p956_p6 = scmp.lt.s32.totalorder %s947_s26, %s947_s26 }
  0x16   : > { %p849_p10 = pnand %p848_p9, %p1161_p1 }
  0x17   : > { %p957_p4 = por %p956_p6, %p955_p3 }
  0x18   : > { %p938_p11 = pneg %p849_p10 }
  0x1a   : > { %p950_p13 = pnand %p948_p12, %p938_p11 }
  0x1c   : > { %p951_p0 = pneg %p950_p13 }
  0x1e   : > { %p958_p5 = pnand %p957_p4, %p951_p0 }
  0x20   : > { %961 = shalt.err (!%p958_p5)
}
  0x21   : > { %s1093_s27 = smov 384   ;;  %s1094_s28 = smov 24  }
  0x22   : > { %s1415_s1 = sld [smem:[#allocation14_spill]]  ;;  %s28_s3 = sadd.s32 1, %s1082_s14 }
  0x23   : > { %p29_p4 = scmp.ge.s32.totalorder %s28_s3, 2  ;;  %s31_s4 = sadd.s32 1, %s1086_s15 }
  0x24   : > { %s40_s5 = sadd.s32 1, %s1070_s11  ;;  %p47_p6 = scmp.ne.s32.totalorder %s1070_s11, %s1066_s10 }
  0x25   : > { %s1431_s3 = smov (%p29_p4, %s28_s3), 0  ;;  %s1433_s4 = smov (!%p29_p4, %s31_s4), %s1086_s15 }
  0x26   : > { %1416 = sst [smem:[#allocation13_spill]] %s1431_s3  ;;  %s36_s6 = ssub.s32 %s1082_s14, %s1431_s3 }
  0x27   : > { %p48_p7 = scmp.eq.s32.totalorder %s1090_s16, 0  ;;  %p33_p9 = scmp.ge.s32.totalorder %s1433_s4, 2 }
  0x28   : > { %851 = dma.hbm_to_vmem [thread:$0]  (!%p849_p10), %s1415_s1, 6144, %s126_s25, [#allocation6], %s1093_s27, %s1093_s27, %s1094_s28  }
  0x29   : > { %p1205_p11 = por %p1165_p2, %p47_p6  ;;  %p1209_p10 = por %p48_p7, %p47_p6 }
  0x2a   : > { %p861_p12 = scmp.lt.s32.totalorder %s1090_s16, 4  ;;  %s1435_s4 = smov (%p33_p9, %s1433_s4), 0 }
  0x2b   : > { %s139_s17 = sand.u32 1, %s1070_s11   ;;  %s738_s18 = sshll.u32 %s1082_s14, 4 }
  0x2c   : > { %s35_s24 = ssub.s32 %s1086_s15, %s1435_s4  ;;  %s737_s26 = sshll.u32 %s139_s17, 7 }
  0x2d   : > { %s37_s25 = sor.u32 %s36_s6, %s35_s24  ;;  %s739_s20 = sshll.u32 %s1086_s15, 5 }
  0x2e   : > { %p38_p13 = scmp.eq.s32.totalorder %s37_s25, 0  ;;  %s143_s27 = scalar_lea.vmem [#allocation2], %s737_s26 }
  0x2f   : > { %s152_s28 = sshll.u32 %s143_s27, 4  ;;  %s149_s30 = sadd.s32 %s739_s20, %s738_s18  ;;  %s153_s28 = int_to_ptr.vmem [resolvable:$true] %s152_s28 }
  0x30   : > { %s1222_s29 = scalar_select %p38_p13, %s1070_s11, %s40_s5  }
  0x31   : > { %s740_s1 = sshll.u32 %s149_s30, 7  ;;  %p1228_p2 = pnand %p861_p12, %p1209_p10 }
  0x32   : > { %s151_s6 = scalar_lea.hbm %s1400_s0, %s740_s1  ;;  %s140_s24 = scalar_lea.sflag [#allocation3], %s139_s17 }
  0x33   : > { %p964_p0 = pneg %p1228_p2  ;;  %s975_s25 = scalar_lea.vmem %s153_s28, 2048 }
  0x34   : > { %p976_p3 = scmp.ne.s32.totalorder %s153_s28, %s975_s25  ;;  %s1095_s5 = smov [#allocation2]  }
  0x35   : > { %s980_s18 = sshll.u32 %s1095_s5, 4  ;;  %s981_s18 = int_to_ptr.vmem [resolvable:$false] %s980_s18 }
  0x36   : > { %p978_p5 = pnand %p976_p3, %p964_p0  ;;  %s982_s8 = scalar_lea.vmem %s981_s18, 4096 }
  0x37   : > { %p983_p6 = scmp.lt.s32.totalorder %s153_s28, %s981_s18  ;;  %p984_p7 = scmp.lt.s32.totalorder %s982_s8, %s975_s25 }
  0x38   : > { %p979_p4 = pneg %p978_p5 }
  0x39   : > { %p985_p9 = por %p984_p7, %p983_p6 }
  0x3b   : > { %p986_p10 = pnand %p985_p9, %p979_p4 }
  0x3d   : > { %989 = shalt.err (!%p986_p10)
}
  0x3e   : > { %s1096_s26 = smov 128   ;;  %s1097_s14 = smov 8  }
  0x3f   : > { %855 = dma.hbm_to_vmem [thread:$0]  (!%p1228_p2), %s151_s6, 2048, %s153_s28, %s140_s24, %s1096_s26, %s1096_s26, %s1097_s14  }
  0x40   : > { %164 = sbr.rel (%p1181_p8) target bundleno = 374 (0x176), region = 28  ;;  %s1242_s1 = sand.u32 (!%p1181_p8), 1, %s1066_s10  }
  0x41   : > { %s742_s22 = sshll.u32 (!%p1181_p8), %s1242_s1, 7  ;;  %s167_s17 = scalar_lea.sflag (!%p1181_p8), [#allocation3], %s1242_s1 }
  0x42   : > { %s1246_s20 = scalar_lea.vmem (!%p1181_p8), [#allocation2], %s742_s22  ;;  %p1420_p12 = scmp.ne.s32.totalorder (!%p1181_p8), %s1411_s21, 0 }
  0x45   : > { %1049 = dma.done.wait (%p1420_p12), %s167_s17, 2048  }
  0x46   : > { %1051 = vsyncadd (%p1420_p12), %s167_s17, 4294965248 }
  0x47   : > { %1053 = dma.done.wait (%p1161_p1), [#allocation6], 6144  }
  0x48   : > { %1055 = vsyncadd (%p1161_p1), [#allocation6], 4294961152  ;;  %v1098_v0 = vmov 0.0   ;;  %v259_v1 = vld [vmem:[#allocation5 + $0x170] sm:$0xff]  ;;  %v258_v2 = vld [vmem:[#allocation5 + $0x168] sm:$0xff]  ;;  %s837_s19 = smul.u32 384, %s1242_s1 }
  0x49   : > { %325 = vmatprep.mubr.f32.mxu0 %v1098_v0  ;;  %v256_v3 = vld [vmem:[#allocation5 + $0x158] sm:$0xff]  ;;  %261 = vmatprep.subr.mxu0 %v259_v1  ;;  %v255_v4 = vld [vmem:[#allocation5 + $0x150] sm:$0xff]  ;;  %v253_v5 = vld [vmem:[#allocation5 + $0x140] sm:$0xff]  ;;  %s838_s23 = smul.u32 48, %s1074_s12  ;;  %s616_s24 = scalar_lea.sflag [#allocation4], %s1242_s1 }
  0x4a   : > { %262 = vmatpush1.msra.mxu0 %v258_v2  ;;  %v252_v6 = vld [vmem:[#allocation5 + $0x138] sm:$0xff]  ;;  %v250_v7 = vld [vmem:[#allocation5 + $0x128] sm:$0xff]  ;;  %v249_v8 = vld [vmem:[#allocation5 + $0x120] sm:$0xff]  ;;  %s1289_s21 = scalar_lea.vmem [#allocation7], %s837_s19  ;;  %s839_s3 = smul.u32 96, %s1078_s13 }
  0x4b   : > { %263 = vmatprep.subr.mxu0 %v256_v3  ;;  %v247_v9 = vld [vmem:[#allocation5 + $0x110] sm:$0xff]  ;;  %v246_v10 = vld [vmem:[#allocation5 + $0x108] sm:$0xff]  ;;  %v244_v11 = vld [vmem:[#allocation5 + $0xf8] sm:$0xff]  ;;  %s632_s30 = sshll.u32 %s1289_s21, 4  ;;  %s1099_s5 = smov [#allocation7]   ;;  %s1345_s30 = int_to_ptr.vmem [resolvable:$true] %s632_s30 }
  0x4c   : > { %264 = vmatpush1.msra.mxu0 %v255_v4  ;;  %v243_v12 = vld [vmem:[#allocation5 + $0xf0] sm:$0xff]  ;;  %v241_v13 = vld [vmem:[#allocation5 + $0xe0] sm:$0xff]  ;;  %v260_v14 = vld [vmem:[#allocation5 + $0x178] sm:$0xff]  ;;  %s629_s27 = sadd.s32 %s839_s3, %s838_s23  ;;  %s990_s25 = scalar_lea.vmem %s1345_s30, 6144 }
  0x4d   : > { %265 = vmatprep.subr.mxu0 %v253_v5  ;;  %v240_v15 = vld [vmem:[#allocation5 + $0xd8] sm:$0xff]  ;;  %781 = vmatprep.subr.mxu1 %v260_v14  ;;  %v257_v16 = vld [vmem:[#allocation5 + $0x160] sm:$0xff]  ;;  %v238_v17 = vld [vmem:[#allocation5 + $0xc8] sm:$0xff]  ;;  %s746_s28 = sshll.u32 %s629_s27, 7  ;;  %p991_p1 = scmp.ne.s32.totalorder %s1345_s30, %s990_s25 }
  0x4e   : > { %266 = vmatpush1.msra.mxu0 %v252_v6  ;;  %782 = vmatpush3.msra.mxu1 %v260_v14  ;;  %v254_v18 = vld [vmem:[#allocation5 + $0x148] sm:$0xff]  ;;  %v237_v19 = vld [vmem:[#allocation5 + $0xc0] sm:$0xff]  ;;  %v235_v20 = vld [vmem:[#allocation5 + $0xb0] sm:$0xff]  ;;  %s1343_s13 = scalar_lea.hbm %s1402_s2, %s746_s28  ;;  %s994_s18 = sshll.u32 %s1099_s5, 4  ;;  %s995_s18 = int_to_ptr.vmem [resolvable:$false] %s994_s18 }
  0x4f   : > { %267 = vmatprep.subr.mxu0 %v250_v7  ;;  %783 = vmatprep.subr.mxu1 %v257_v16  ;;  %v251_v21 = vld [vmem:[#allocation5 + $0x130] sm:$0xff]  ;;  %v234_v22 = vld [vmem:[#allocation5 + $0xa8] sm:$0xff]  ;;  %v232_v23 = vld [vmem:[#allocation5 + $0x98] sm:$0xff]  ;;  %p992_p8 = pnand %p991_p1, %p1205_p11  ;;  %s996_s8 = scalar_lea.vmem %s995_s18, 12288 }
  0x50   : > { %268 = vmatpush1.msra.mxu0 %v249_v8  ;;  %784 = vmatpush3.msra.mxu1 %v257_v16  ;;  %v248_v24 = vld [vmem:[#allocation5 + $0x118] sm:$0xff]  ;;  %v231_v25 = vld [vmem:[#allocation5 + $0x90] sm:$0xff]  ;;  %v229_v26 = vld [vmem:[#allocation5 + $0x80] sm:$0xff]  ;;  %p997_p2 = scmp.lt.s32.totalorder %s1345_s30, %s995_s18  ;;  %p998_p0 = scmp.lt.s32.totalorder %s996_s8, %s990_s25 }
  0x51   : > { %269 = vmatprep.subr.mxu0 %v247_v9  ;;  %785 = vmatprep.subr.mxu1 %v254_v18  ;;  %v245_v27 = vld [vmem:[#allocation5 + $0x100] sm:$0xff]  ;;  %v228_v28 = vld [vmem:[#allocation5 + $0x78] sm:$0xff]  ;;  %v226_v29 = vld [vmem:[#allocation5 + $0x68] sm:$0xff]  ;;  %p993_p13 = pneg %p992_p8 }
  0x52   : > { %270 = vmatpush1.msra.mxu0 %v246_v10  ;;  %786 = vmatpush3.msra.mxu1 %v254_v18  ;;  %v242_v30 = vld [vmem:[#allocation5 + $0xe8] sm:$0xff]  ;;  %v225_v31 = vld [vmem:[#allocation5 + $0x60] sm:$0xff]  ;;  %v223_v32 = vld [vmem:[#allocation5 + $0x50] sm:$0xff]  ;;  %p999_p3 = por %p998_p0, %p997_p2 }
  0x53   : > { %271 = vmatprep.subr.mxu0 %v244_v11  ;;  %787 = vmatprep.subr.mxu1 %v251_v21  ;;  %v239_v33 = vld [vmem:[#allocation5 + $0xd0] sm:$0xff]  ;;  %v222_v34 = vld [vmem:[#allocation5 + $0x48] sm:$0xff]  ;;  %v220_v35 = vld [vmem:[#allocation5 + $0x38] sm:$0xff] }
  0x54   : > { %272 = vmatpush1.msra.mxu0 %v243_v12  ;;  %788 = vmatpush3.msra.mxu1 %v251_v21  ;;  %v236_v36 = vld [vmem:[#allocation5 + $0xb8] sm:$0xff]  ;;  %v219_v37 = vld [vmem:[#allocation5 + $0x30] sm:$0xff]  ;;  %v217_v38 = vld [vmem:[#allocation5 + $0x20] sm:$0xff]  ;;  %p1000_p5 = pnand %p999_p3, %p993_p13 }
  0x55   : > { %273 = vmatprep.subr.mxu0 %v241_v13  ;;  %789 = vmatprep.subr.mxu1 %v248_v24  ;;  %v233_v39 = vld [vmem:[#allocation5 + $0xa0] sm:$0xff]  ;;  %v216_v40 = vld [vmem:[#allocation5 + $0x18] sm:$0xff]  ;;  %v214_v41 = vld [vmem:[#allocation5 + $0x8] sm:$0xff] }
  0x56   : > { %274 = vmatpush1.msra.mxu0 %v240_v15  ;;  %790 = vmatpush3.msra.mxu1 %v248_v24  ;;  %v230_v42 = vld [vmem:[#allocation5 + $0x88] sm:$0xff]  ;;  %v213_v43 = vld [vmem:[#allocation5] sm:$0xff]  ;;  %v227_v45 = vld [vmem:[#allocation5 + $0x70] sm:$0xff] }
  0x57   : > { %275 = vmatprep.subr.mxu0 %v238_v17  ;;  %791 = vmatprep.subr.mxu1 %v245_v27  ;;  %v197_v44 = vld [vmem:[%s1246_s20] sm:$0xff]  ;;  %v224_v46 = vld [vmem:[#allocation5 + $0x58] sm:$0xff]  ;;  %v198_v47 = vld [vmem:[%s1246_s20 + $0x8] sm:$0xff] }
  0x58   : > { %276 = vmatpush1.msra.mxu0 %v237_v19  ;;  %792 = vmatpush3.msra.mxu1 %v245_v27  ;;  %v221_v48 = vld [vmem:[#allocation5 + $0x40] sm:$0xff]  ;;  %v218_v49 = vld [vmem:[#allocation5 + $0x28] sm:$0xff]  ;;  %v199_v50 = vld [vmem:[%s1246_s20 + $0x10] sm:$0xff] }
  0x59   : > { %277 = vmatprep.subr.mxu0 %v235_v20  ;;  %793 = vmatprep.subr.mxu1 %v242_v30  ;;  %v215_v51 = vld [vmem:[#allocation5 + $0x10] sm:$0xff]  ;;  %v200_v52 = vld [vmem:[%s1246_s20 + $0x18] sm:$0xff]  ;;  %v201_v53 = vld [vmem:[%s1246_s20 + $0x20] sm:$0xff] }
  0x5a   : > { %278 = vmatpush1.msra.mxu0 %v234_v22  ;;  %794 = vmatpush3.msra.mxu1 %v242_v30  ;;  %v202_v54 = vld [vmem:[%s1246_s20 + $0x28] sm:$0xff]  ;;  %v203_v55 = vld [vmem:[%s1246_s20 + $0x30] sm:$0xff]  ;;  %v204_v56 = vld [vmem:[%s1246_s20 + $0x38] sm:$0xff] }
  0x5b   : > { %279 = vmatprep.subr.mxu0 %v232_v23  ;;  %795 = vmatprep.subr.mxu1 %v239_v33  ;;  %v205_v57 = vld [vmem:[%s1246_s20 + $0x40] sm:$0xff]  ;;  %v206_v58 = vld [vmem:[%s1246_s20 + $0x48] sm:$0xff]  ;;  %v207_v59 = vld [vmem:[%s1246_s20 + $0x50] sm:$0xff] }
  0x5c   : > { %280 = vmatpush1.msra.mxu0 %v231_v25  ;;  %796 = vmatpush3.msra.mxu1 %v239_v33  ;;  %v208_v60 = vld [vmem:[%s1246_s20 + $0x58] sm:$0xff]  ;;  %v209_v61 = vld [vmem:[%s1246_s20 + $0x60] sm:$0xff]  ;;  %v211_v62 = vld [vmem:[%s1246_s20 + $0x70] sm:$0xff] }
  0x5d   : > { %281 = vmatprep.subr.mxu0 %v229_v26  ;;  %797 = vmatprep.subr.mxu1 %v236_v36  ;;  %v210_v63 = vld [vmem:[%s1246_s20 + $0x68] sm:$0xff]  ;;  %v212_v1 = vld [vmem:[%s1246_s20 + $0x78] sm:$0xff] }
  0x5e   : > { %282 = vmatpush1.msra.mxu0 %v228_v28  ;;  %798 = vmatpush3.msra.mxu1 %v236_v36 }
  0x5f   : > { %283 = vmatprep.subr.mxu0 %v226_v29  ;;  %799 = vmatprep.subr.mxu1 %v233_v39 }
  0x60   : > { %284 = vmatpush1.msra.mxu0 %v225_v31  ;;  %800 = vmatpush3.msra.mxu1 %v233_v39 }
  0x61   : > { %285 = vmatprep.subr.mxu0 %v223_v32  ;;  %801 = vmatprep.subr.mxu1 %v230_v42 }
  0x62   : > { %286 = vmatpush1.msra.mxu0 %v222_v34  ;;  %802 = vmatpush3.msra.mxu1 %v230_v42 }
  0x63   : > { %287 = vmatprep.subr.mxu0 %v220_v35  ;;  %803 = vmatprep.subr.mxu1 %v227_v45 }
  0x64   : > { %288 = vmatpush1.msra.mxu0 %v219_v37  ;;  %804 = vmatpush3.msra.mxu1 %v227_v45 }
  0x65   : > { %289 = vmatprep.subr.mxu0 %v217_v38  ;;  %805 = vmatprep.subr.mxu1 %v224_v46 }
  0x66   : > { %290 = vmatpush1.msra.mxu0 %v216_v40  ;;  %813 = vmatprep.mubr.f32.mxu1 %v197_v44 }
  0x67   : > { %291 = vmatprep.subr.mxu0 %v214_v41  ;;  %806 = vmatpush3.msra.mxu1 %v224_v46 }
  0x68   : > { %292 = vmatpush1.msra.mxu0 %v213_v43  ;;  %807 = vmatprep.subr.mxu1 %v221_v48 }
  0x69   : > { %326 = vmatmul.mubr.f32.vlgmr.msra.gmra.mxu0 %v197_v44  ;;  %808 = vmatpush3.msra.mxu1 %v221_v48 }
  0x6a   : > { %331 = vmatprep.mubr.f32.mxu0 %v1098_v0  ;;  %809 = vmatprep.subr.mxu1 %v218_v49 }
  0x6b   : > { %810 = vmatpush3.msra.mxu1 %v218_v49 }
  0x6c   : > { %811 = vmatprep.subr.mxu1 %v215_v51 }
  0x6d   : > { %332 = vmatmul.mubr.f32.gmra.mxu0 %v198_v47  ;;  %812 = vmatpush3.msra.mxu1 %v215_v51 }
  0x6e   : > { %337 = vmatprep.mubr.f32.mxu0 %v1098_v0  ;;  %814 = vmatmul.mubr.f32.vlgmr.msra.gmra.mxu1 %v198_v47 }
  0x6f   : > { %816 = vmatprep.mubr.f32.mxu1 %v199_v50 }
  0x71   : > { %338 = vmatmul.mubr.f32.gmra.mxu0 %v199_v50 }
  0x72   : > { %343 = vmatprep.mubr.f32.mxu0 %v1098_v0  ;;  %817 = vmatmul.mubr.f32.gmra.mxu1 %v200_v52 }
  0x73   : > { %819 = vmatprep.mubr.f32.mxu1 %v201_v53 }
  0x75   : > { %344 = vmatmul.mubr.f32.gmra.mxu0 %v200_v52 }
  0x76   : > { %349 = vmatprep.mubr.f32.mxu0 %v1098_v0  ;;  %820 = vmatmul.mubr.f32.gmra.mxu1 %v202_v54 }
  0x77   : > { %822 = vmatprep.mubr.f32.mxu1 %v203_v55 }
  0x79   : > { %350 = vmatmul.mubr.f32.gmra.mxu0 %v201_v53 }
  0x7a   : > { %355 = vmatprep.mubr.f32.mxu0 %v1098_v0  ;;  %823 = vmatmul.mubr.f32.gmra.mxu1 %v204_v56 }
  0x7b   : > { %825 = vmatprep.mubr.f32.mxu1 %v205_v57 }
  0x7d   : > { %356 = vmatmul.mubr.f32.gmra.mxu0 %v202_v54 }
  0x7e   : > { %361 = vmatprep.mubr.f32.mxu0 %v1098_v0  ;;  %826 = vmatmul.mubr.f32.gmra.mxu1 %v206_v58 }
  0x7f   : > { %828 = vmatprep.mubr.f32.mxu1 %v207_v59 }
  0x81   : > { %362 = vmatmul.mubr.f32.gmra.mxu0 %v203_v55 }
  0x82   : > { %367 = vmatprep.mubr.f32.mxu0 %v1098_v0  ;;  %829 = vmatmul.mubr.f32.gmra.mxu1 %v208_v60 }
  0x83   : > { %831 = vmatprep.mubr.f32.mxu1 %v209_v61 }
  0x85   : > { %368 = vmatmul.mubr.f32.gmra.mxu0 %v204_v56 }
  0x86   : > { %373 = vmatprep.mubr.f32.mxu0 %v1098_v0  ;;  %832 = vmatmul.mubr.f32.gmra.mxu1 %v210_v63 }
  0x87   : > { %834 = vmatprep.mubr.f32.mxu1 %v211_v62 }
  0x89   : > { %374 = vmatmul.mubr.f32.gmra.mxu0 %v205_v57 }
  0x8a   : > { %379 = vmatprep.mubr.f32.mxu0 %v1098_v0  ;;  %835 = vmatmul.mubr.f32.gmra.mxu1 %v212_v1 }
  0x8d   : > { %380 = vmatmul.mubr.f32.gmra.mxu0 %v206_v58 }
  0x8e   : > { %385 = vmatprep.mubr.f32.mxu0 %v1098_v0 }
  0x91   : > { %386 = vmatmul.mubr.f32.gmra.mxu0 %v207_v59 }
  0x92   : > { %391 = vmatprep.mubr.f32.mxu0 %v1098_v0 }
  0x95   : > { %392 = vmatmul.mubr.f32.gmra.mxu0 %v208_v60 }
  0x96   : > { %397 = vmatprep.mubr.f32.mxu0 %v1098_v0 }
  0x99   : > { %398 = vmatmul.mubr.f32.gmra.mxu0 %v209_v61 }
  0x9a   : > { %403 = vmatprep.mubr.f32.mxu0 %v1098_v0 }
  0x9d   : > { %404 = vmatmul.mubr.f32.gmra.mxu0 %v210_v63 }
  0x9e   : > { %409 = vmatprep.mubr.f32.mxu0 %v1098_v0 }
  0xa1   : > { %410 = vmatmul.mubr.f32.gmra.mxu0 %v211_v62 }
  0xa2   : > { %415 = vmatprep.mubr.f32.mxu0 %v1098_v0 }
  0xa5   : > { %416 = vmatmul.mubr.f32.gmra.mxu0 %v212_v1 }
 0x129   : > { %v327_v2 = vpop.f32.mrf.mxu0 }
 0x12a   : > { %567 = vst [vmem:[%s1289_s21] sm:$0xff] %v327_v2 }
 0x12b   : > { %v329_v3 = vpop.f32.mrf.mxu0 }
 0x12c   : > { %568 = vst [vmem:[%s1289_s21 + $0x8] sm:$0xff] %v329_v3 }
 0x12d   : > { %v333_v4 = vpop.f32.mrf.mxu0 }
 0x12e   : > { %570 = vst [vmem:[%s1289_s21 + $0x18] sm:$0xff] %v333_v4  ;;  %v815_v7 = vpop.f32.mrf.mxu1 }
 0x12f   : > { %v335_v0 = vpop.f32.mrf.mxu0  ;;  %572 = vst [vmem:[%s1289_s21 + $0x28] sm:$0xff] %v815_v7 }
 0x130   : > { %571 = vst [vmem:[%s1289_s21 + $0x20] sm:$0xff] %v335_v0  ;;  %v488_v9 = vpop.f32.mrf.mxu1 }
 0x131   : > { %v339_v5 = vpop.f32.mrf.mxu0  ;;  %569 = vst [vmem:[%s1289_s21 + $0x10] sm:$0xff] %v488_v9 }
 0x132   : > { %573 = vst [vmem:[%s1289_s21 + $0x30] sm:$0xff] %v339_v5  ;;  %v818_v11 = vpop.f32.mrf.mxu1 }
 0x133   : > { %v341_v6 = vpop.f32.mrf.mxu0  ;;  %578 = vst [vmem:[%s1289_s21 + $0x58] sm:$0xff] %v818_v11 }
 0x134   : > { %574 = vst [vmem:[%s1289_s21 + $0x38] sm:$0xff] %v341_v6  ;;  %v498_v13 = vpop.f32.mrf.mxu1 }
 0x135   : > { %v345_v8 = vpop.f32.mrf.mxu0  ;;  %575 = vst [vmem:[%s1289_s21 + $0x40] sm:$0xff] %v498_v13 }
 0x136   : > { %576 = vst [vmem:[%s1289_s21 + $0x48] sm:$0xff] %v345_v8  ;;  %v821_v15 = vpop.f32.mrf.mxu1 }
 0x137   : > { %v347_v10 = vpop.f32.mrf.mxu0  ;;  %584 = vst [vmem:[%s1289_s21 + $0x88] sm:$0xff] %v821_v15 }
 0x138   : > { %577 = vst [vmem:[%s1289_s21 + $0x50] sm:$0xff] %v347_v10  ;;  %v508_v17 = vpop.f32.mrf.mxu1 }
 0x139   : > { %v351_v12 = vpop.f32.mrf.mxu0  ;;  %581 = vst [vmem:[%s1289_s21 + $0x70] sm:$0xff] %v508_v17 }
 0x13a   : > { %579 = vst [vmem:[%s1289_s21 + $0x60] sm:$0xff] %v351_v12  ;;  %v824_v19 = vpop.f32.mrf.mxu1 }
 0x13b   : > { %v353_v14 = vpop.f32.mrf.mxu0  ;;  %590 = vst [vmem:[%s1289_s21 + $0xb8] sm:$0xff] %v824_v19 }
 0x13c   : > { %580 = vst [vmem:[%s1289_s21 + $0x68] sm:$0xff] %v353_v14  ;;  %v518_v21 = vpop.f32.mrf.mxu1 }
 0x13d   : > { %v357_v16 = vpop.f32.mrf.mxu0  ;;  %587 = vst [vmem:[%s1289_s21 + $0xa0] sm:$0xff] %v518_v21 }
 0x13e   : > { %582 = vst [vmem:[%s1289_s21 + $0x78] sm:$0xff] %v357_v16  ;;  %v827_v23 = vpop.f32.mrf.mxu1 }
 0x13f   : > { %v359_v18 = vpop.f32.mrf.mxu0  ;;  %596 = vst [vmem:[%s1289_s21 + $0xe8] sm:$0xff] %v827_v23 }
 0x140   : > { %583 = vst [vmem:[%s1289_s21 + $0x80] sm:$0xff] %v359_v18  ;;  %v528_v25 = vpop.f32.mrf.mxu1 }
 0x141   : > { %v363_v20 = vpop.f32.mrf.mxu0  ;;  %593 = vst [vmem:[%s1289_s21 + $0xd0] sm:$0xff] %v528_v25 }
 0x142   : > { %585 = vst [vmem:[%s1289_s21 + $0x90] sm:$0xff] %v363_v20  ;;  %v830_v27 = vpop.f32.mrf.mxu1 }
 0x143   : > { %v365_v22 = vpop.f32.mrf.mxu0  ;;  %602 = vst [vmem:[%s1289_s21 + $0x118] sm:$0xff] %v830_v27 }
 0x144   : > { %586 = vst [vmem:[%s1289_s21 + $0x98] sm:$0xff] %v365_v22  ;;  %v538_v29 = vpop.f32.mrf.mxu1 }
 0x145   : > { %v369_v24 = vpop.f32.mrf.mxu0  ;;  %599 = vst [vmem:[%s1289_s21 + $0x100] sm:$0xff] %v538_v29 }
 0x146   : > { %588 = vst [vmem:[%s1289_s21 + $0xa8] sm:$0xff] %v369_v24  ;;  %v833_v31 = vpop.f32.mrf.mxu1 }
 0x147   : > { %v371_v26 = vpop.f32.mrf.mxu0  ;;  %608 = vst [vmem:[%s1289_s21 + $0x148] sm:$0xff] %v833_v31 }
 0x148   : > { %589 = vst [vmem:[%s1289_s21 + $0xb0] sm:$0xff] %v371_v26  ;;  %v548_v33 = vpop.f32.mrf.mxu1 }
 0x149   : > { %v375_v28 = vpop.f32.mrf.mxu0  ;;  %605 = vst [vmem:[%s1289_s21 + $0x130] sm:$0xff] %v548_v33 }
 0x14a   : > { %591 = vst [vmem:[%s1289_s21 + $0xc0] sm:$0xff] %v375_v28  ;;  %v836_v35 = vpop.f32.mrf.mxu1 }
 0x14b   : > { %v377_v30 = vpop.f32.mrf.mxu0  ;;  %614 = vst [vmem:[%s1289_s21 + $0x178] sm:$0xff] %v836_v35 }
 0x14c   : > { %592 = vst [vmem:[%s1289_s21 + $0xc8] sm:$0xff] %v377_v30  ;;  %v558_v37 = vpop.f32.mrf.mxu1 }
 0x14d   : > { %v381_v32 = vpop.f32.mrf.mxu0  ;;  %611 = vst [vmem:[%s1289_s21 + $0x160] sm:$0xff] %v558_v37 }
 0x14e   : > { %594 = vst [vmem:[%s1289_s21 + $0xd8] sm:$0xff] %v381_v32 }
 0x14f   : > { %v383_v34 = vpop.f32.mrf.mxu0 }
 0x150   : > { %595 = vst [vmem:[%s1289_s21 + $0xe0] sm:$0xff] %v383_v34 }
 0x151   : > { %v387_v36 = vpop.f32.mrf.mxu0 }
 0x152   : > { %597 = vst [vmem:[%s1289_s21 + $0xf0] sm:$0xff] %v387_v36 }
 0x153   : > { %v389_v38 = vpop.f32.mrf.mxu0 }
 0x154   : > { %598 = vst [vmem:[%s1289_s21 + $0xf8] sm:$0xff] %v389_v38 }
 0x155   : > { %v393_v39 = vpop.f32.mrf.mxu0 }
 0x156   : > { %600 = vst [vmem:[%s1289_s21 + $0x108] sm:$0xff] %v393_v39 }
 0x157   : > { %v395_v40 = vpop.f32.mrf.mxu0 }
 0x158   : > { %601 = vst [vmem:[%s1289_s21 + $0x110] sm:$0xff] %v395_v40 }
 0x159   : > { %v399_v41 = vpop.f32.mrf.mxu0 }
 0x15a   : > { %603 = vst [vmem:[%s1289_s21 + $0x120] sm:$0xff] %v399_v41 }
 0x15b   : > { %v401_v42 = vpop.f32.mrf.mxu0 }
 0x15c   : > { %604 = vst [vmem:[%s1289_s21 + $0x128] sm:$0xff] %v401_v42 }
 0x15d   : > { %v405_v43 = vpop.f32.mrf.mxu0 }
 0x15e   : > { %606 = vst [vmem:[%s1289_s21 + $0x138] sm:$0xff] %v405_v43 }
 0x15f   : > { %v407_v44 = vpop.f32.mrf.mxu0 }
 0x160   : > { %607 = vst [vmem:[%s1289_s21 + $0x140] sm:$0xff] %v407_v44 }
 0x161   : > { %v411_v45 = vpop.f32.mrf.mxu0 }
 0x162   : > { %609 = vst [vmem:[%s1289_s21 + $0x150] sm:$0xff] %v411_v45 }
 0x163   : > { %v413_v46 = vpop.f32.mrf.mxu0 }
 0x164   : > { %610 = vst [vmem:[%s1289_s21 + $0x158] sm:$0xff] %v413_v46 }
 0x165   : > { %v417_v47 = vpop.f32.mrf.mxu0 }
 0x166   : > { %612 = vst [vmem:[%s1289_s21 + $0x168] sm:$0xff] %v417_v47 }
 0x167   : > { %v419_v48 = vpop.f32.mrf.mxu0 }
 0x168   : > { %613 = vst [vmem:[%s1289_s21 + $0x170] sm:$0xff] %v419_v48 }
 0x169   : > { %1003 = shalt.err (!%p1000_p5)
}
 0x16a   : > { %s1004_s26 = scalar_lea.hbm %s1343_s13, 6144  ;;  %s1008_s17 = scalar_lea.hbm %s1402_s2, 24576 }
 0x16b   : > { %p1005_p4 = scmp.ne.s32.totalorder %s1343_s13, %s1004_s26  ;;  %p1009_p9 = scmp.lt.s32.totalorder %s1343_s13, %s1402_s2 }
 0x16c   : > { %p1010_p10 = scmp.lt.s32.totalorder %s1008_s17, %s1004_s26 }
 0x16d   : > { %p1006_p6 = pnand %p1005_p4, %p1205_p11 }
 0x16e   : > { %p1011_p12 = por %p1010_p10, %p1009_p9 }
 0x16f   : > { %p1007_p7 = pneg %p1006_p6 }
 0x171   : > { %p1012_p1 = pnand %p1011_p12, %p1007_p7 }
 0x173   : > { %1015 = shalt.err (!%p1012_p1)
}
 0x174   : > { %s1100_s21 = smov 384   ;;  %s1101_s23 = smov 24  }
 0x175   : > { %846 = dma.vmem_to_hbm [thread:$0]  (%p1205_p11), %s1345_s30, 6144, %s1343_s13, %s616_s24, %s1100_s21, %s1100_s21, %s1101_s23  }
 0x176 PF: > { %s1421_s3 = sld [smem:[#allocation12_spill]]  ;;  %p863_p8 = scmp.ge.s32.totalorder %s1090_s16, 2 }
 0x177   : > { %s647_s27 = sand.u32 1, %s1062_s9  }
 0x178   : > { %s648_s28 = scalar_lea.sflag [#allocation4], %s647_s27 }
 0x17c   : > { %p1422_p13 = scmp.ne.s32.totalorder %s1421_s3, 0 }
 0x17e   : > { %p857_p2 = pnand %p863_p8, %p1422_p13 }
 0x180   : > { %p858_p0 = pneg %p857_p2 }
 0x182   : > { %1057 = dma.done.wait (%p858_p0), %s648_s28, 6144  }
 0x183   : > { %1059 = vsyncadd (%p858_p0), %s648_s28, 4294961152  ;;  %s19_s16 = sadd.s32 1, %s1090_s16   ;;  %s1423_s12 = sld [smem:[#allocation11_spill]] }
 0x184   : > { %p16_p3 = scmp.ge.s32.totalorder %s19_s16, 6   ;;  %s1424_s14 = sld [smem:[#allocation13_spill]] }
 0x185   : > { %s1425_s9 = smov %s1066_s10  ;;  %s1426_s10 = smov %s1070_s11 }
 0x186   : > { %s1427_s11 = smov %s1222_s29  ;;  %s1428_s13 = smov %s1086_s15 }
 0x187   : > { %s1429_s15 = smov %s1435_s4  ;;  %18 = sbr.rel (!%p16_p3) target bundleno = 10 (0xa), region = 77 }
 0x18c   :  { %653 = vsyncpa [#allocation3], 1 }
 0x18d   :  { %655 = vsyncpa [#allocation3 + $0x1], 1 }
 0x18e   :  { %656 = vsyncpa [#allocation6], 1 }
 0x18f   :  { %657 = vsyncpa [#allocation4], 1 }
 0x190   :  { %659 = vsyncpa [#allocation4 + $0x1], 1 }

</bundles_post_ra>
